<compile_context>
chip_gen: v7x
topology: tpu7x:2x2x1
jax: 0.10.0
libtpu: 0.0.40
codegen_flags: <defaults>
</compile_context>

<pallas_src>
import functools
import math

import jax
import jax.numpy as jnp
from jax.experimental import pallas as pl
from jax.experimental.pallas import tpu as pltpu


def _hswish(v):
    # torch h_swish: x * relu6(x + 3) / 6
    return v * jnp.minimum(jnp.maximum(v + 3.0, 0.0), 6.0) * (1.0 / 6.0)


def _sigmoid(v):
    # written explicitly with exp (EUP) to keep the lowering path simple
    return 1.0 / (1.0 + jnp.exp(-v))


def _coord_attn_kernel(x_ref, prow_ref, pcol_ref, rh_ref, rw_ref,
                       w1_ref, b1_ref, wh_ref, bh_ref, ww_ref, bw_ref,
                       out_ref, *, h, w):
    """Fused CoordinateLayer for one batch element.

    x_ref / out_ref : (c, h*w)  lane-dense flat spatial layout.
    prow / pcol     : (h*w, h) / (h*w, w) 0/1 selection matrices (sum over W / over H).
    rh / rw         : (h, h*w) / (w, h*w) their transposes (gate broadcast).
    """
    xv = x_ref[...].astype(jnp.float32)                                # (c, hw)

    # --- coordinate pooling (MXU reductions over lane-dense loads) ---------
    sum_over_w = jnp.dot(xv, prow_ref[...],
                         preferred_element_type=jnp.float32)           # (c, h)
    sum_over_h = jnp.dot(xv, pcol_ref[...],
                         preferred_element_type=jnp.float32)           # (c, w)
    x_h_pool = sum_over_h * (1.0 / h)   # torch x_h: mean over H, per W column
    x_w_pool = sum_over_w * (1.0 / w)   # torch x_w: mean over W, per H row

    # --- shared 1x1 conv + folded eval-mode BN + h_swish --------------------
    # conv1 / BN / h_swish are position-wise, so torch's cat([x_h, x_w]) ->
    # conv -> split([h, w]) pipeline equals processing the two halves
    # independently for square inputs (h == w, asserted in the wrapper).
    w1 = w1_ref[...]                                                   # (mip, c)
    b1 = b1_ref[...]                                                   # (mip, 1)
    z_h = _hswish(jnp.dot(w1, x_h_pool,
                          preferred_element_type=jnp.float32) + b1)    # (mip, w)
    z_w = _hswish(jnp.dot(w1, x_w_pool,
                          preferred_element_type=jnp.float32) + b1)    # (mip, h)

    # --- per-direction 1x1 convs + sigmoid gates ----------------------------
    a_h = _sigmoid(jnp.dot(wh_ref[...], z_h,
                           preferred_element_type=jnp.float32) + bh_ref[...])  # (oup, h)
    a_w = _sigmoid(jnp.dot(ww_ref[...], z_w,
                           preferred_element_type=jnp.float32) + bw_ref[...])  # (oup, w)

    # --- broadcast gates back to the flat (c, h*w) layout via the MXU -------
    gate = (jnp.dot(a_h, rh_ref[...], preferred_element_type=jnp.float32) *
            jnp.dot(a_w, rw_ref[...], preferred_element_type=jnp.float32))     # (oup, hw)

    # out[c, i*w + j] = x[c, i, j] * a_h[c, i] * a_w[c, j]   (lane-dense store)
    out_ref[...] = (xv * gate).astype(out_ref.dtype)


def coordinate_layer_forward(x, params):
    """x: (n, c, h, w) NCHW. Returns (n, c, h, w)."""
    n, c, h, w = x.shape
    assert h == w, "TODO(synk): non-square feature maps not supported by the kernel"
    hw = h * w
    mip, inp = params["w1"].shape
    oup = params["wh"].shape[0]
    assert inp == c, "input channels must match conv1"
    assert oup == c, "oup must equal inp for the identity * a_h * a_w broadcast"

    f32 = jnp.float32

    # Fold eval-mode BatchNorm into conv1.
    scale = params["bn_gamma"] / jnp.sqrt(params["bn_var"] + params["bn_eps"])
    eff_w1 = (params["w1"] * scale[:, None]).astype(f32)                    # (mip, c)
    eff_b1 = ((params["b1"] - params["bn_mean"]) * scale
              + params["bn_beta"]).astype(f32).reshape(mip, 1)              # (mip, 1)
    wh = params["wh"].astype(f32)
    bh = params["bh"].astype(f32).reshape(oup, 1)
    ww = params["ww"].astype(f32)
    bw = params["bw"].astype(f32).reshape(oup, 1)

    # Constant 0/1 selection matrices for the pooled reductions and for
    # broadcasting the gates back to the flat (c, h*w) layout.
    row_idx = jnp.arange(hw, dtype=jnp.int32) // w      # H index of each flat position
    col_idx = jnp.arange(hw, dtype=jnp.int32) % w       # W index of each flat position
    p_row = (row_idx[:, None] == jnp.arange(h, dtype=jnp.int32)[None, :]).astype(f32)  # (hw, h)
    p_col = (col_idx[:, None] == jnp.arange(w, dtype=jnp.int32)[None, :]).astype(f32)  # (hw, w)
    r_h = p_row.T                                                                      # (h, hw)
    r_w = p_col.T                                                                      # (w, hw)

    # Free, contiguous reshape to the lane-dense slab layout.
    x_flat = x.reshape(n, c, hw)

    kernel = functools.partial(_coord_attn_kernel, h=h, w=w)

    def full(a):
        return pl.BlockSpec(a.shape, lambda i, _nd=a.ndim: (0,) * _nd)

    in_specs = [
        pl.BlockSpec((pl.Squeezed(), c, hw), lambda i: (i, 0, 0)),   # x
        full(p_row), full(p_col), full(r_h), full(r_w),
        full(eff_w1), full(eff_b1), full(wh), full(bh), full(ww), full(bw),
    ]
    out_spec = pl.BlockSpec((pl.Squeezed(), c, hw), lambda i: (i, 0, 0))

    # Advisory cost estimate (memory-bound copy-like op + small matmuls).
    flops = int(n * (2 * c * hw * (h + w)          # pooling matmuls
                     + 2 * mip * c * (h + w)       # conv1 on both halves
                     + 2 * oup * mip * (h + w)     # conv_h / conv_w
                     + 2 * oup * (h + w) * hw      # gate broadcast matmuls
                     + 3 * c * hw))                # final elementwise multiplies
    transcendentals = int(n * oup * (h + w))       # sigmoids
    bytes_accessed = int(2 * x.size * x.dtype.itemsize
                         + 4 * (p_row.size + p_col.size + r_h.size + r_w.size)
                         + 4 * (eff_w1.size + wh.size + ww.size + 3 * mip + 2 * oup))

    # Bound scoped VMEM: x/out tiles (double-buffered) + constant matrices + margin.
    est_vmem = 4 * (4 * c * hw + 4 * hw * (h + w)) + (2 << 20)
    vmem_limit = int(min(64 * 1024 * 1024, max(32 * 1024 * 1024, est_vmem)))

    out_flat = pl.pallas_call(
        kernel,
        out_shape=jax.ShapeDtypeStruct((n, c, hw), x.dtype),
        grid=(n,),
        in_specs=in_specs,
        out_specs=out_spec,
        compiler_params=pltpu.CompilerParams(
            dimension_semantics=("parallel",),
            vmem_limit_bytes=vmem_limit,
        ),
        cost_estimate=pl.CostEstimate(flops=flops,
                                      transcendentals=transcendentals,
                                      bytes_accessed=bytes_accessed),
    )(x_flat, p_row, p_col, r_h, r_w, eff_w1, eff_b1, wh, bh, ww, bw)

    return out_flat.reshape(n, c, h, w)


def coordinate_layer_reference(x, p):
    """Pure-JAX reference that literally mirrors the PyTorch forward (eval-mode BN)."""
    n, c, h, w = x.shape
    hp = jax.lax.Precision.HIGHEST
    x_h = jnp.mean(x, axis=2)                                   # (n, c, w)
    x_w = jnp.mean(x, axis=3)                                   # (n, c, h)
    y = jnp.concatenate([x_h, x_w], axis=2)                     # (n, c, w + h)
    y = jnp.einsum("mc,ncl->nml", p["w1"], y, precision=hp) + p["b1"][None, :, None]
    inv_std = 1.0 / jnp.sqrt(p["bn_var"] + p["bn_eps"])
    y = ((y - p["bn_mean"][None, :, None]) * inv_std[None, :, None]
         * p["bn_gamma"][None, :, None] + p["bn_beta"][None, :, None])
    y = y * jnp.clip(y + 3.0, 0.0, 6.0) / 6.0                   # h_swish
    y_h = y[:, :, :h]
    y_w = y[:, :, h:h + w]
    a_h = jax.nn.sigmoid(jnp.einsum("om,nml->nol", p["wh"], y_h, precision=hp)
                         + p["bh"][None, :, None])              # (n, oup, h)
    a_w = jax.nn.sigmoid(jnp.einsum("om,nml->nol", p["ww"], y_w, precision=hp)
                         + p["bw"][None, :, None])              # (n, oup, w)
    return x * a_w[:, :, None, :] * a_h[:, :, :, None]


class CoordinateLayer:
    """JAX/Pallas equivalent of the PyTorch CoordinateLayer (inference mode)."""

    def __init__(self, inp, oup, reduction=32, *, key):
        mip = max(8, inp // reduction)
        ks = jax.random.split(key, 10)
        bnd1 = 1.0 / math.sqrt(inp)
        bnd2 = 1.0 / math.sqrt(mip)

        def u(k, shape, lo, hi):
            return jax.random.uniform(k, shape, jnp.float32, lo, hi)

        self.params = {
            "w1": u(ks[0], (mip, inp), -bnd1, bnd1),
            "b1": u(ks[1], (mip,), -bnd1, bnd1),
            "bn_gamma": u(ks[2], (mip,), 0.5, 1.5),
            "bn_beta": 0.1 * jax.random.normal(ks[3], (mip,), jnp.float32),
            "bn_mean": 0.1 * jax.random.normal(ks[4], (mip,), jnp.float32),
            "bn_var": u(ks[5], (mip,), 0.5, 1.5),
            "bn_eps": 1e-5,
            "wh": u(ks[6], (oup, mip), -bnd2, bnd2),
            "bh": u(ks[7], (oup,), -bnd2, bnd2),
            "ww": u(ks[8], (oup, mip), -bnd2, bnd2),
            "bw": u(ks[9], (oup,), -bnd2, bnd2),
        }
        self.inp, self.oup, self.mip = inp, oup, mip

    def __call__(self, x):
        return coordinate_layer_forward(x, self.params)


if __name__ == "__main__":
    key = jax.random.PRNGKey(0)
    kx, kp = jax.random.split(key)

    # Small NCHW feature map; c=8 keeps the (c, h*w) kernel tiles sublane-dense
    # and h*w=256 keeps them lane-dense (multiple of 128).
    n, c, h, w = 2, 8, 16, 16
    x = jax.random.normal(kx, (n, c, h, w), dtype=jnp.float32)

    layer = CoordinateLayer(inp=c, oup=c, reduction=32, key=kp)
    out = jax.block_until_ready(layer(x))

    ref = jax.block_until_ready(coordinate_layer_reference(x, layer.params))
    assert out.shape == ref.shape == (n, c, h, w)
    assert out.dtype == ref.dtype
    max_err = float(jnp.max(jnp.abs(out - ref)))
    # In-kernel MXU matmuls may use the TPU default (reduced) matmul precision;
    # the tolerance covers that while still catching structural/broadcast bugs.
    assert max_err < 2e-2, f"max abs error {max_err}"
    print("KERNEL_OK")
</pallas_src>

<mosaic_0001>
module attributes {stable_mosaic.version = 11 : i64} {
  func.func @_coord_attn_kernel(%arg0: i32, %arg1: memref<1x8x256xf32, #tpu.memory_space<vmem>>, %arg2: memref<256x16xf32, #tpu.memory_space<vmem>>, %arg3: memref<256x16xf32, #tpu.memory_space<vmem>>, %arg4: memref<16x256xf32, #tpu.memory_space<vmem>>, %arg5: memref<16x256xf32, #tpu.memory_space<vmem>>, %arg6: memref<8x8xf32, #tpu.memory_space<vmem>>, %arg7: memref<8x1xf32, #tpu.memory_space<vmem>>, %arg8: memref<8x8xf32, #tpu.memory_space<vmem>>, %arg9: memref<8x1xf32, #tpu.memory_space<vmem>>, %arg10: memref<8x8xf32, #tpu.memory_space<vmem>>, %arg11: memref<8x1xf32, #tpu.memory_space<vmem>>, %arg12: memref<1x8x256xf32, #tpu.memory_space<vmem>>) attributes {dimension_semantics = [#tpu.dimension_semantics<parallel>], iteration_bounds = array<i64: 2>, scalar_prefetch = 0 : i64, scratch_operands = 0 : i64, tpu.core_type = #tpu.core_type<tc>, window_params = [{transform_indices = @transform_0, window_bounds = array<i64: 1, 8, 256>}, {pipeline_mode = #tpu.pipeline_mode<synchronous>, transform_indices = @transform_1, window_bounds = array<i64: 256, 16>}, {pipeline_mode = #tpu.pipeline_mode<synchronous>, transform_indices = @transform_2, window_bounds = array<i64: 256, 16>}, {pipeline_mode = #tpu.pipeline_mode<synchronous>, transform_indices = @transform_3, window_bounds = array<i64: 16, 256>}, {pipeline_mode = #tpu.pipeline_mode<synchronous>, transform_indices = @transform_4, window_bounds = array<i64: 16, 256>}, {pipeline_mode = #tpu.pipeline_mode<synchronous>, transform_indices = @transform_5, window_bounds = array<i64: 8, 8>}, {pipeline_mode = #tpu.pipeline_mode<synchronous>, transform_indices = @transform_6, window_bounds = array<i64: 8, 1>}, {pipeline_mode = #tpu.pipeline_mode<synchronous>, transform_indices = @transform_7, window_bounds = array<i64: 8, 8>}, {pipeline_mode = #tpu.pipeline_mode<synchronous>, transform_indices = @transform_8, window_bounds = array<i64: 8, 1>}, {pipeline_mode = #tpu.pipeline_mode<synchronous>, transform_indices = @transform_9, window_bounds = array<i64: 8, 8>}, {pipeline_mode = #tpu.pipeline_mode<synchronous>, transform_indices = @transform_10, window_bounds = array<i64: 8, 1>}, {transform_indices = @transform_11, window_bounds = array<i64: 1, 8, 256>}]} {
    %c0 = arith.constant 0 : index
    %c0_0 = arith.constant 0 : index
    %c0_1 = arith.constant 0 : index
    %0 = vector.load %arg1[%c0, %c0_0, %c0_1] : memref<1x8x256xf32, #tpu.memory_space<vmem>>, vector<1x8x256xf32>
    %1 = vector.shape_cast %0 : vector<1x8x256xf32> to vector<8x256xf32>
    %c0_2 = arith.constant 0 : index
    %c0_3 = arith.constant 0 : index
    %2 = vector.load %arg2[%c0_2, %c0_3] : memref<256x16xf32, #tpu.memory_space<vmem>>, vector<256x16xf32>
    %cst = arith.constant dense<0.000000e+00> : vector<8x16xf32>
    %3 = tpu.matmul %1, %2, %cst {dimension_numbers = #tpu.dot_dimension_numbers<[1], [0], [0], [1], [0, 0, 1, 1], [], []>} : vector<8x256xf32>, vector<256x16xf32>, vector<8x16xf32> -> vector<8x16xf32>
    %c0_4 = arith.constant 0 : index
    %c0_5 = arith.constant 0 : index
    %4 = vector.load %arg3[%c0_4, %c0_5] : memref<256x16xf32, #tpu.memory_space<vmem>>, vector<256x16xf32>
    %cst_6 = arith.constant dense<0.000000e+00> : vector<8x16xf32>
    %5 = tpu.matmul %1, %4, %cst_6 {dimension_numbers = #tpu.dot_dimension_numbers<[1], [0], [0], [1], [0, 0, 1, 1], [], []>} : vector<8x256xf32>, vector<256x16xf32>, vector<8x16xf32> -> vector<8x16xf32>
    %cst_7 = arith.constant 6.250000e-02 : f32
    %6 = vector.broadcast %cst_7 : f32 to vector<8x16xf32>
    %7 = arith.mulf %5, %6 : vector<8x16xf32>
    %cst_8 = arith.constant 6.250000e-02 : f32
    %8 = vector.broadcast %cst_8 : f32 to vector<8x16xf32>
    %9 = arith.mulf %3, %8 : vector<8x16xf32>
    %c0_9 = arith.constant 0 : index
    %c0_10 = arith.constant 0 : index
    %10 = vector.load %arg6[%c0_9, %c0_10] : memref<8x8xf32, #tpu.memory_space<vmem>>, vector<8x8xf32>
    %c0_11 = arith.constant 0 : index
    %c0_12 = arith.constant 0 : index
    %11 = vector.load %arg7[%c0_11, %c0_12] : memref<8x1xf32, #tpu.memory_space<vmem>>, vector<8x1xf32>
    %cst_13 = arith.constant dense<0.000000e+00> : vector<8x16xf32>
    %12 = tpu.matmul %10, %7, %cst_13 {dimension_numbers = #tpu.dot_dimension_numbers<[1], [0], [0], [1], [0, 0, 1, 1], [], []>} : vector<8x8xf32>, vector<8x16xf32>, vector<8x16xf32> -> vector<8x16xf32>
    %13 = vector.broadcast %11 : vector<8x1xf32> to vector<8x16xf32>
    %14 = arith.addf %12, %13 : vector<8x16xf32>
    %cst_14 = arith.constant 3.000000e+00 : f32
    %15 = vector.broadcast %cst_14 : f32 to vector<8x16xf32>
    %16 = arith.addf %14, %15 : vector<8x16xf32>
    %cst_15 = arith.constant 0.000000e+00 : f32
    %17 = vector.broadcast %cst_15 : f32 to vector<8x16xf32>
    %18 = arith.maximumf %16, %17 : vector<8x16xf32>
    %cst_16 = arith.constant 6.000000e+00 : f32
    %19 = vector.broadcast %cst_16 : f32 to vector<8x16xf32>
    %20 = arith.minimumf %18, %19 : vector<8x16xf32>
    %21 = arith.mulf %14, %20 : vector<8x16xf32>
    %cst_17 = arith.constant 0.166666672 : f32
    %22 = vector.broadcast %cst_17 : f32 to vector<8x16xf32>
    %23 = arith.mulf %21, %22 : vector<8x16xf32>
    %cst_18 = arith.constant dense<0.000000e+00> : vector<8x16xf32>
    %24 = tpu.matmul %10, %9, %cst_18 {dimension_numbers = #tpu.dot_dimension_numbers<[1], [0], [0], [1], [0, 0, 1, 1], [], []>} : vector<8x8xf32>, vector<8x16xf32>, vector<8x16xf32> -> vector<8x16xf32>
    %25 = vector.broadcast %11 : vector<8x1xf32> to vector<8x16xf32>
    %26 = arith.addf %24, %25 : vector<8x16xf32>
    %cst_19 = arith.constant 3.000000e+00 : f32
    %27 = vector.broadcast %cst_19 : f32 to vector<8x16xf32>
    %28 = arith.addf %26, %27 : vector<8x16xf32>
    %cst_20 = arith.constant 0.000000e+00 : f32
    %29 = vector.broadcast %cst_20 : f32 to vector<8x16xf32>
    %30 = arith.maximumf %28, %29 : vector<8x16xf32>
    %cst_21 = arith.constant 6.000000e+00 : f32
    %31 = vector.broadcast %cst_21 : f32 to vector<8x16xf32>
    %32 = arith.minimumf %30, %31 : vector<8x16xf32>
    %33 = arith.mulf %26, %32 : vector<8x16xf32>
    %cst_22 = arith.constant 0.166666672 : f32
    %34 = vector.broadcast %cst_22 : f32 to vector<8x16xf32>
    %35 = arith.mulf %33, %34 : vector<8x16xf32>
    %c0_23 = arith.constant 0 : index
    %c0_24 = arith.constant 0 : index
    %36 = vector.load %arg8[%c0_23, %c0_24] : memref<8x8xf32, #tpu.memory_space<vmem>>, vector<8x8xf32>
    %cst_25 = arith.constant dense<0.000000e+00> : vector<8x16xf32>
    %37 = tpu.matmul %36, %23, %cst_25 {dimension_numbers = #tpu.dot_dimension_numbers<[1], [0], [0], [1], [0, 0, 1, 1], [], []>} : vector<8x8xf32>, vector<8x16xf32>, vector<8x16xf32> -> vector<8x16xf32>
    %c0_26 = arith.constant 0 : index
    %c0_27 = arith.constant 0 : index
    %38 = vector.load %arg9[%c0_26, %c0_27] : memref<8x1xf32, #tpu.memory_space<vmem>>, vector<8x1xf32>
    %39 = vector.broadcast %38 : vector<8x1xf32> to vector<8x16xf32>
    %40 = arith.addf %37, %39 : vector<8x16xf32>
    %cst_28 = arith.constant 0.000000e+00 : f32
    %41 = vector.broadcast %cst_28 : f32 to vector<8x16xf32>
    %42 = arith.subf %41, %40 : vector<8x16xf32>
    %43 = math.exp %42 : vector<8x16xf32>
    %cst_29 = arith.constant 1.000000e+00 : f32
    %44 = vector.broadcast %cst_29 : f32 to vector<8x16xf32>
    %45 = arith.addf %44, %43 : vector<8x16xf32>
    %cst_30 = arith.constant 1.000000e+00 : f32
    %46 = vector.broadcast %cst_30 : f32 to vector<8x16xf32>
    %47 = arith.divf %46, %45 : vector<8x16xf32>
    %c0_31 = arith.constant 0 : index
    %c0_32 = arith.constant 0 : index
    %48 = vector.load %arg10[%c0_31, %c0_32] : memref<8x8xf32, #tpu.memory_space<vmem>>, vector<8x8xf32>
    %cst_33 = arith.constant dense<0.000000e+00> : vector<8x16xf32>
    %49 = tpu.matmul %48, %35, %cst_33 {dimension_numbers = #tpu.dot_dimension_numbers<[1], [0], [0], [1], [0, 0, 1, 1], [], []>} : vector<8x8xf32>, vector<8x16xf32>, vector<8x16xf32> -> vector<8x16xf32>
    %c0_34 = arith.constant 0 : index
    %c0_35 = arith.constant 0 : index
    %50 = vector.load %arg11[%c0_34, %c0_35] : memref<8x1xf32, #tpu.memory_space<vmem>>, vector<8x1xf32>
    %51 = vector.broadcast %50 : vector<8x1xf32> to vector<8x16xf32>
    %52 = arith.addf %49, %51 : vector<8x16xf32>
    %cst_36 = arith.constant 0.000000e+00 : f32
    %53 = vector.broadcast %cst_36 : f32 to vector<8x16xf32>
    %54 = arith.subf %53, %52 : vector<8x16xf32>
    %55 = math.exp %54 : vector<8x16xf32>
    %cst_37 = arith.constant 1.000000e+00 : f32
    %56 = vector.broadcast %cst_37 : f32 to vector<8x16xf32>
    %57 = arith.addf %56, %55 : vector<8x16xf32>
    %cst_38 = arith.constant 1.000000e+00 : f32
    %58 = vector.broadcast %cst_38 : f32 to vector<8x16xf32>
    %59 = arith.divf %58, %57 : vector<8x16xf32>
    %c0_39 = arith.constant 0 : index
    %c0_40 = arith.constant 0 : index
    %60 = vector.load %arg4[%c0_39, %c0_40] : memref<16x256xf32, #tpu.memory_space<vmem>>, vector<16x256xf32>
    %cst_41 = arith.constant dense<0.000000e+00> : vector<8x256xf32>
    %61 = tpu.matmul %47, %60, %cst_41 {dimension_numbers = #tpu.dot_dimension_numbers<[1], [0], [0], [1], [0, 0, 1, 1], [], []>} : vector<8x16xf32>, vector<16x256xf32>, vector<8x256xf32> -> vector<8x256xf32>
    %c0_42 = arith.constant 0 : index
    %c0_43 = arith.constant 0 : index
    %62 = vector.load %arg5[%c0_42, %c0_43] : memref<16x256xf32, #tpu.memory_space<vmem>>, vector<16x256xf32>
    %cst_44 = arith.constant dense<0.000000e+00> : vector<8x256xf32>
    %63 = tpu.matmul %59, %62, %cst_44 {dimension_numbers = #tpu.dot_dimension_numbers<[1], [0], [0], [1], [0, 0, 1, 1], [], []>} : vector<8x16xf32>, vector<16x256xf32>, vector<8x256xf32> -> vector<8x256xf32>
    %64 = arith.mulf %61, %63 : vector<8x256xf32>
    %65 = arith.mulf %1, %64 : vector<8x256xf32>
    %c0_45 = arith.constant 0 : index
    %c0_46 = arith.constant 0 : index
    %c0_47 = arith.constant 0 : index
    %66 = vector.load %arg12[%c0_45, %c0_46, %c0_47] : memref<1x8x256xf32, #tpu.memory_space<vmem>>, vector<1x8x256xf32>
    %67 = vector.shape_cast %66 : vector<1x8x256xf32> to vector<8x256xf32>
    %68 = vector.shape_cast %65 : vector<8x256xf32> to vector<1x8x256xf32>
    tpu.vector_store %arg12[%c0_45, %c0_46, %c0_47], %68 {strides = array<i32>} : memref<1x8x256xf32, #tpu.memory_space<vmem>>, vector<1x8x256xf32>,
    return
  }
  func.func @transform_0(%arg0: i32) -> (i32, i32, i32) {
    %c0_i32 = arith.constant 0 : i32
    %c0_i32_0 = arith.constant 0 : i32
    %c0_i32_1 = arith.constant 0 : i32
    return %arg0, %c0_i32, %c0_i32_0 : i32, i32, i32
  }
  func.func @transform_1(%arg0: i32) -> (i32, i32) {
    %c0_i32 = arith.constant 0 : i32
    %c0_i32_0 = arith.constant 0 : i32
    %c0_i32_1 = arith.constant 0 : i32
    return %c0_i32, %c0_i32_0 : i32, i32
  }
  func.func @transform_2(%arg0: i32) -> (i32, i32) {
    %c0_i32 = arith.constant 0 : i32
    %c0_i32_0 = arith.constant 0 : i32
    %c0_i32_1 = arith.constant 0 : i32
    return %c0_i32, %c0_i32_0 : i32, i32
  }
  func.func @transform_3(%arg0: i32) -> (i32, i32) {
    %c0_i32 = arith.constant 0 : i32
    %c0_i32_0 = arith.constant 0 : i32
    %c0_i32_1 = arith.constant 0 : i32
    return %c0_i32, %c0_i32_0 : i32, i32
  }
  func.func @transform_4(%arg0: i32) -> (i32, i32) {
    %c0_i32 = arith.constant 0 : i32
    %c0_i32_0 = arith.constant 0 : i32
    %c0_i32_1 = arith.constant 0 : i32
    return %c0_i32, %c0_i32_0 : i32, i32
  }
  func.func @transform_5(%arg0: i32) -> (i32, i32) {
    %c0_i32 = arith.constant 0 : i32
    %c0_i32_0 = arith.constant 0 : i32
    %c0_i32_1 = arith.constant 0 : i32
    return %c0_i32, %c0_i32_0 : i32, i32
  }
  func.func @transform_6(%arg0: i32) -> (i32, i32) {
    %c0_i32 = arith.constant 0 : i32
    %c0_i32_0 = arith.constant 0 : i32
    %c0_i32_1 = arith.constant 0 : i32
    return %c0_i32, %c0_i32_0 : i32, i32
  }
  func.func @transform_7(%arg0: i32) -> (i32, i32) {
    %c0_i32 = arith.constant 0 : i32
    %c0_i32_0 = arith.constant 0 : i32
    %c0_i32_1 = arith.constant 0 : i32
    return %c0_i32, %c0_i32_0 : i32, i32
  }
  func.func @transform_8(%arg0: i32) -> (i32, i32) {
    %c0_i32 = arith.constant 0 : i32
    %c0_i32_0 = arith.constant 0 : i32
    %c0_i32_1 = arith.constant 0 : i32
    return %c0_i32, %c0_i32_0 : i32, i32
  }
  func.func @transform_9(%arg0: i32) -> (i32, i32) {
    %c0_i32 = arith.constant 0 : i32
    %c0_i32_0 = arith.constant 0 : i32
    %c0_i32_1 = arith.constant 0 : i32
    return %c0_i32, %c0_i32_0 : i32, i32
  }
  func.func @transform_10(%arg0: i32) -> (i32, i32) {
    %c0_i32 = arith.constant 0 : i32
    %c0_i32_0 = arith.constant 0 : i32
    %c0_i32_1 = arith.constant 0 : i32
    return %c0_i32, %c0_i32_0 : i32, i32
  }
  func.func @transform_11(%arg0: i32) -> (i32, i32, i32) {
    %c0_i32 = arith.constant 0 : i32
    %c0_i32_0 = arith.constant 0 : i32
    %c0_i32_1 = arith.constant 0 : i32
    return %arg0, %c0_i32, %c0_i32_0 : i32, i32, i32
  }
}

</mosaic_0001>

<bundles_post_ra>
// kernel: tpu_custom_call.1
= control target key start
LH: loop header
LB: loop body
LE: loop exit
PB: predicated region body
PF: predicated region fallthrough
CT: control target
= control target key end

     0   :  { %16 = vsyncpa [#allocation3], 0  ;;  %s1894_s0 = inlined_call_operand.vmem [shape: f32[2,8,256], index: 0, kind: input, shape index: {}]   ;;  %s1895_s1 = inlined_call_operand.vmem [shape: f32[256,16], index: 1, kind: input, shape index: {}]   ;;  %s1896_s2 = inlined_call_operand.vmem [shape: f32[256,16], index: 2, kind: input, shape index: {}]   ;;  %s1897_s3 = inlined_call_operand.vmem [shape: f32[16,256], index: 3, kind: input, shape index: {}]   ;;  %s1898_s4 = inlined_call_operand.vmem [shape: f32[16,256], index: 4, kind: input, shape index: {}]   ;;  %s1899_s5 = inlined_call_operand.vmem [shape: f32[8,8], index: 5, kind: input, shape index: {}]   ;;  %s1900_s6 = inlined_call_operand.vmem [shape: f32[8,1], index: 6, kind: input, shape index: {}]   ;;  %s1901_s7 = inlined_call_operand.vmem [shape: f32[8,8], index: 7, kind: input, shape index: {}]   ;;  %s1902_s8 = inlined_call_operand.vmem [shape: f32[8,1], index: 8, kind: input, shape index: {}]   ;;  %s1903_s9 = inlined_call_operand.vmem [shape: f32[8,8], index: 9, kind: input, shape index: {}]   ;;  %s1904_s10 = inlined_call_operand.vmem [shape: f32[8,1], index: 10, kind: input, shape index: {}]   ;;  %s1905_s11 = inlined_call_operand.hbm [shape: f32[2,8,256], index: 11, kind: output, shape index: {}]  }
   0x1   :  { %18 = vsyncpa [#allocation3 + $0x1], 0  ;;  %s1533_s17 = smov 0   ;;  %s1535_s18 = smov 0  }
   0x2   :  { %s1537_s19 = smov 0   ;;  %s1539_s20 = smov 0  }
   0x3 LB: > { %1907 = sst [smem:[#allocation5_spill]] %s1463_s19  ;;  %s1554_s21 = sadd.s32 4294967295, %s1467_s20   ;;  %s1467_s20 = sphi %s1539_s20, %s1915_s20   ;;  %s1463_s19 = sphi %s1537_s19, %s1912_s19   ;;  %s1459_s18 = sphi %s1535_s18, %s1914_s18   ;;  %s1455_s17 = sphi %s1533_s17, %s1913_s17  }
   0x4   : > { %s1163_s22 = sadd.s32 4294967294, %s1467_s20   ;;  %s1558_s23 = sadd.s32 1, %s1467_s20  }
   0x5   : > { %s267_s24 = sadd.s32 1, %s1463_s19  ;;  %s264_s25 = ssub.s32 %s1467_s20, %s1558_s23 }
   0x6   : > { %p277_p0 = scmp.ne.s32.totalorder %s1463_s19, %s1459_s18  ;;  %p265_p1 = scmp.eq.s32.totalorder %s264_s25, 0 }
   0x7   : > { %p278_p2 = scmp.eq.s32.totalorder %s1554_s21, 1  ;;  %p283_p3 = scmp.ne.s32.totalorder %s1459_s18, %s1455_s17 }
   0x8   : > { %p284_p4 = scmp.eq.s32.totalorder %s1163_s22, 1  ;;  %p1166_p7 = scmp.ge.s32.totalorder %s1467_s20, 1 }
   0x9   : > { %s1569_s26 = scalar_select %p265_p1, %s1463_s19, %s267_s24  }
   0xa   : > { %p1571_p5 = por %p278_p2, %p277_p0  ;;  %p1575_p6 = por %p284_p4, %p283_p3 }
   0xb   : > { %1908 = sst [smem:[#allocation6_spill]] %s1569_s26  ;;  %p340_p8 = scmp.lt.s32.totalorder %s1467_s20, 3 }
   0xd   : > { %p341_p9 = pnand %p1166_p7, %p340_p8 }
   0xe   : > { %v403_v0 = vld [vmem:[%s1895_s1 + $0x80] sm:$0xff] (!%p341_p9)  ;;  %v404_v1 = vld [vmem:[%s1895_s1 + $0x88] sm:$0xff] (!%p341_p9)  ;;  %v405_v11 = vld [vmem:[%s1895_s1 + $0x90] sm:$0xff] (!%p341_p9)  ;;  %p380_p10 = scmp.lt.s32.totalorder (!%p341_p9), %s1554_s21, 1  ;;  %vm1470_vm0 = vmmov (!%p341_p9), 0   ;;  %vm600_vm1 = vcmask (!%p341_p9), 64512  }
   0xf   : > { %344 = sbr.rel (%p341_p9) target bundleno = 967 (0x3c7), region = 64  ;;  %v505_v2 = vld [vmem:[%s1896_s2 + $0x80] sm:$0xff] (!%p341_p9)  ;;  %v1281_v3 = vpack.c.bf16 (!%p341_p9), %v404_v1, %v403_v0  ;;  %v506_v4 = vld [vmem:[%s1896_s2 + $0x88] sm:$0xff] (!%p341_p9)  ;;  %v406_v13 = vld [vmem:[%s1895_s1 + $0x98] sm:$0xff] (!%p341_p9)  ;;  %vm930_vm2 = vcmask (!%p341_p9), 130048   ;;  %s377_s30 = sand.u32 (!%p341_p9), 1, %s1459_s18  }
  0x10   : > { %v387_v5 = vld [vmem:[%s1895_s1] sm:$0xff] (!%p341_p9)  ;;  %v388_v6 = vld [vmem:[%s1895_s1 + $0x8] sm:$0xff] (!%p341_p9)  ;;  %v1313_v7 = vpack.c.bf16 (!%p341_p9), %v506_v4, %v505_v2  ;;  %v507_v14 = vld [vmem:[%s1896_s2 + $0x90] sm:$0xff] (!%p341_p9)  ;;  %v1285_v16 = vpack.c.bf16 (!%p341_p9), %v406_v13, %v405_v11  ;;  %s1167_s12 = sshll.u32 (!%p341_p9), %s377_s30, 4  ;;  %s1182_s14 = sshll.u32 (!%p341_p9), %s1554_s21, 8 }
  0x11   : > { %v1283_v8 = vpack.c.bf16 (!%p341_p9), %v388_v6, %v387_v5  ;;  %v489_v9 = vld [vmem:[%s1896_s2] sm:$0xff] (!%p341_p9)  ;;  %v490_v10 = vld [vmem:[%s1896_s2 + $0x8] sm:$0xff] (!%p341_p9)  ;;  %1282 = vmatprep.subr.bf16.mxu0 (!%p341_p9), %v1281_v3  ;;  %v508_v15 = vld [vmem:[%s1896_s2 + $0x98] sm:$0xff] (!%p341_p9)  ;;  %s379_s16 = scalar_lea.vmem (!%p341_p9), [#allocation2], %s1167_s12  ;;  %s1852_s26 = scalar_lea.hbm (!%p341_p9), %s1905_s11, %s1182_s14 }
  0x12   : > { %v1315_v12 = vpack.c.bf16 (!%p341_p9), %v490_v10, %v489_v9  ;;  %1314 = vmatprep.subr.bf16.mxu1 (!%p341_p9), %v1313_v7  ;;  %v1317_v17 = vpack.c.bf16 (!%p341_p9), %v508_v15, %v507_v14  ;;  %v389_v18 = vld [vmem:[%s1895_s1 + $0x10] sm:$0xff] (!%p341_p9)  ;;  %v390_v19 = vld [vmem:[%s1895_s1 + $0x18] sm:$0xff] (!%p341_p9)  ;;  %v407_v23 = vld [vmem:[%s1895_s1 + $0xa0] sm:$0xff] (!%p341_p9)  ;;  %s1472_s19 = smov (!%p341_p9), [#allocation2]  }
  0x13   : > { %1284 = vmatpush3.bf16.msra.mxu0 (!%p341_p9), %v1283_v8  ;;  %v491_v20 = vld [vmem:[%s1896_s2 + $0x10] sm:$0xff] (!%p341_p9)  ;;  %v1287_v21 = vpack.c.bf16 (!%p341_p9), %v390_v19, %v389_v18  ;;  %v492_v22 = vld [vmem:[%s1896_s2 + $0x18] sm:$0xff] (!%p341_p9)  ;;  %v408_v24 = vld [vmem:[%s1895_s1 + $0xa8] sm:$0xff] (!%p341_p9) }
  0x14   : > { %1316 = vmatpush3.bf16.msra.mxu1 (!%p341_p9), %v1315_v12  ;;  %1286 = vmatprep.subr.bf16.mxu0 (!%p341_p9), %v1285_v16  ;;  %v1319_v25 = vpack.c.bf16 (!%p341_p9), %v492_v22, %v491_v20  ;;  %v1289_v26 = vpack.c.bf16 (!%p341_p9), %v408_v24, %v407_v23  ;;  %v509_v27 = vld [vmem:[%s1896_s2 + $0xa0] sm:$0xff] (!%p341_p9)  ;;  %v510_v28 = vld [vmem:[%s1896_s2 + $0xa8] sm:$0xff] (!%p341_p9)  ;;  %v409_v35 = vld [vmem:[%s1895_s1 + $0xb0] sm:$0xff] (!%p341_p9) }
  0x15   : > { %1318 = vmatprep.subr.bf16.mxu1 (!%p341_p9), %v1317_v17  ;;  %v391_v29 = vld [vmem:[%s1895_s1 + $0x20] sm:$0xff] (!%p341_p9)  ;;  %v1321_v30 = vpack.c.bf16 (!%p341_p9), %v510_v28, %v509_v27  ;;  %v392_v31 = vld [vmem:[%s1895_s1 + $0x28] sm:$0xff] (!%p341_p9)  ;;  %v410_v36 = vld [vmem:[%s1895_s1 + $0xb8] sm:$0xff] (!%p341_p9) }
  0x16   : > { %v493_v32 = vld [vmem:[%s1896_s2 + $0x20] sm:$0xff]  ;;  %v494_v33 = vld [vmem:[%s1896_s2 + $0x28] sm:$0xff]  ;;  %v1291_v34 = vpack.c.bf16 %v392_v31, %v391_v29  ;;  %v511_v37 = vld [vmem:[%s1896_s2 + $0xb0] sm:$0xff]  ;;  %v1293_v39 = vpack.c.bf16 %v410_v36, %v409_v35  ;;  %s1693_s15 = scalar_select %p380_p10, %s1554_s21, 1  ;;  %v1471_v36 = vmov 0  }
  0x17   : > { %1288 = vmatpush3.bf16.msra.mxu0 %v1287_v21  ;;  %v1323_v38 = vpack.c.bf16 %v494_v33, %v493_v32  ;;  %v512_v40 = vld [vmem:[%s1896_s2 + $0xb8] sm:$0xff]  ;;  %v393_v41 = vld [vmem:[%s1895_s1 + $0x30] sm:$0xff]  ;;  %v411_v46 = vld [vmem:[%s1895_s1 + $0xc0] sm:$0xff]  ;;  %1395 = vset.pattern.permute.xlu0 %v1471_v36  ;;  %s1090_s21 = scalar_lea.sflag [#allocation3], %s377_s30 }
  0x18   : > { %1320 = vmatpush3.bf16.msra.mxu1 %v1319_v25  ;;  %1290 = vmatprep.subr.bf16.mxu0 %v1289_v26  ;;  %v394_v42 = vld [vmem:[%s1895_s1 + $0x38] sm:$0xff]  ;;  %v1325_v43 = vpack.c.bf16 %v512_v40, %v511_v37  ;;  %v495_v44 = vld [vmem:[%s1896_s2 + $0x30] sm:$0xff]  ;;  %v412_v47 = vld [vmem:[%s1895_s1 + $0xc8] sm:$0xff]  ;;  %s1181_s25 = sshll.u32 %s1693_s15, 4  ;;  %s1104_s15 = sshll.u32 %s379_s16, 4  ;;  %s1854_s15 = int_to_ptr.vmem [resolvable:$true] %s1104_s15 }
  0x19   : > { %1322 = vmatprep.subr.bf16.mxu1 %v1321_v30  ;;  %v496_v45 = vld [vmem:[%s1896_s2 + $0x38] sm:$0xff]  ;;  %v513_v48 = vld [vmem:[%s1896_s2 + $0xc0] sm:$0xff]  ;;  %v514_v49 = vld [vmem:[%s1896_s2 + $0xc8] sm:$0xff]  ;;  %v1295_v50 = vpack.c.bf16 %v394_v42, %v393_v41  ;;  %v1297_v52 = vpack.c.bf16 %v412_v47, %v411_v46  ;;  %s1741_s13 = scalar_lea.vmem %s1894_s0, %s1181_s25  ;;  %1396 = vset.pattern.permute.xlu1 %v1471_v36  ;;  %s1405_s25 = scalar_lea.vmem %s1854_s15, 256 }
  0x1a   : > { %v1327_v51 = vpack.c.bf16 %v496_v45, %v495_v44  ;;  %v395_v53 = vld [vmem:[%s1895_s1 + $0x40] sm:$0xff]  ;;  %v396_v54 = vld [vmem:[%s1895_s1 + $0x48] sm:$0xff]  ;;  %v1329_v56 = vpack.c.bf16 %v514_v49, %v513_v48  ;;  %v413_v58 = vld [vmem:[%s1895_s1 + $0xd0] sm:$0xff]  ;;  %p1406_p11 = scmp.ne.s32.totalorder %s1854_s15, %s1405_s25 }
  0x1b   : > { %1292 = vmatpush3.bf16.msra.mxu0 %v1291_v34  ;;  %v497_v55 = vld [vmem:[%s1896_s2 + $0x40] sm:$0xff]  ;;  %v498_v57 = vld [vmem:[%s1896_s2 + $0x48] sm:$0xff]  ;;  %v414_v59 = vld [vmem:[%s1895_s1 + $0xd8] sm:$0xff]  ;;  %v1299_v62 = vpack.c.bf16 %v396_v54, %v395_v53  ;;  %v1469_v34 = vmov 0.0  }
  0x1c   : > { %1324 = vmatpush3.bf16.msra.mxu1 %v1323_v38  ;;  %1294 = vmatprep.subr.bf16.mxu0 %v1293_v39  ;;  %v515_v60 = vld [vmem:[%s1896_s2 + $0xd0] sm:$0xff]  ;;  %v516_v61 = vld [vmem:[%s1896_s2 + $0xd8] sm:$0xff]  ;;  %v1331_v63 = vpack.c.bf16 %v498_v57, %v497_v55  ;;  %v1301_v0 = vpack.c.bf16 %v414_v59, %v413_v58  ;;  %v415_v6 = vld [vmem:[%s1895_s1 + $0xe0] sm:$0xff]  ;;  %p1407_p12 = pnand %p1406_p11, %p1571_p5 }
  0x1d   : > { %1326 = vmatprep.subr.bf16.mxu1 %v1325_v43  ;;  %v397_v1 = vld [vmem:[%s1895_s1 + $0x50] sm:$0xff]  ;;  %v398_v2 = vld [vmem:[%s1895_s1 + $0x58] sm:$0xff]  ;;  %v1333_v4 = vpack.c.bf16 %v516_v61, %v515_v60  ;;  %v416_v7 = vld [vmem:[%s1895_s1 + $0xe8] sm:$0xff] }
  0x1e   : > { %v499_v3 = vld [vmem:[%s1896_s2 + $0x50] sm:$0xff]  ;;  %v500_v5 = vld [vmem:[%s1896_s2 + $0x58] sm:$0xff]  ;;  %v517_v8 = vld [vmem:[%s1896_s2 + $0xe0] sm:$0xff]  ;;  %v1303_v10 = vpack.c.bf16 %v398_v2, %v397_v1  ;;  %v1305_v13 = vpack.c.bf16 %v416_v7, %v415_v6  ;;  %p1408_p13 = pneg %p1407_p12 }
  0x1f   : > { %1296 = vmatpush3.bf16.msra.mxu0 %v1295_v50  ;;  %v518_v9 = vld [vmem:[%s1896_s2 + $0xe8] sm:$0xff]  ;;  %v399_v11 = vld [vmem:[%s1895_s1 + $0x60] sm:$0xff]  ;;  %v1335_v12 = vpack.c.bf16 %v500_v5, %v499_v3  ;;  %v417_v19 = vld [vmem:[%s1895_s1 + $0xf0] sm:$0xff] }
  0x20   : > { %1328 = vmatpush3.bf16.msra.mxu1 %v1327_v51  ;;  %1298 = vmatprep.subr.bf16.mxu0 %v1297_v52  ;;  %v400_v14 = vld [vmem:[%s1895_s1 + $0x68] sm:$0xff]  ;;  %v501_v15 = vld [vmem:[%s1896_s2 + $0x60] sm:$0xff]  ;;  %v1337_v17 = vpack.c.bf16 %v518_v9, %v517_v8  ;;  %v418_v20 = vld [vmem:[%s1895_s1 + $0xf8] sm:$0xff] }
  0x21   : > { %1330 = vmatprep.subr.bf16.mxu1 %v1329_v56  ;;  %v1759_v16 = vld [vmem:[%s1741_s13 + $0x8] sm:$0xff]  ;;  %v519_v21 = vld [vmem:[%s1896_s2 + $0xf0] sm:$0xff]  ;;  %v520_v22 = vld [vmem:[%s1896_s2 + $0xf8] sm:$0xff]  ;;  %v1307_v23 = vpack.c.bf16 %v400_v14, %v399_v11  ;;  %v1309_v25 = vpack.c.bf16 %v418_v20, %v417_v19 }
  0x22   : > { %v502_v18 = vld [vmem:[%s1896_s2 + $0x68] sm:$0xff]  ;;  %483 = vmatprep.mubr.f32.mxu0 %v1759_v16  ;;  %585 = vmatprep.mubr.f32.mxu1 %v1759_v16  ;;  %v401_v26 = vld [vmem:[%s1895_s1 + $0x70] sm:$0xff]  ;;  %v402_v27 = vld [vmem:[%s1895_s1 + $0x78] sm:$0xff]  ;;  %v1341_v28 = vpack.c.bf16 %v520_v22, %v519_v21 }
  0x23   : > { %1300 = vmatpush3.bf16.msra.mxu0 %v1299_v62  ;;  %v1339_v24 = vpack.c.bf16 %v502_v18, %v501_v15  ;;  %v503_v29 = vld [vmem:[%s1896_s2 + $0x70] sm:$0xff]  ;;  %v504_v30 = vld [vmem:[%s1896_s2 + $0x78] sm:$0xff]  ;;  %v1311_v31 = vpack.c.bf16 %v402_v27, %v401_v26  ;;  %v1791_v33 = vld [vmem:[%s1741_s13] sm:$0xff]  ;;  %s1409_s13 = sshll.u32 %s1472_s19, 4  ;;  %s1410_s13 = int_to_ptr.vmem [resolvable:$false] %s1409_s13 }
  0x24   : > { %1332 = vmatpush3.bf16.msra.mxu1 %v1331_v63  ;;  %1302 = vmatprep.subr.bf16.mxu0 %v1301_v0  ;;  %v1343_v32 = vpack.c.bf16 %v504_v30, %v503_v29  ;;  %v594_v35 = vld [vmem:[%s1900_s6] sm:$0xff]  ;;  %v927_v3 = vld [vmem:[%s1897_s3 + $0x8] sm:$0xff]  ;;  %v1008_v7 = vld [vmem:[%s1898_s4 + $0x18] sm:$0xff]  ;;  %s1411_s29 = scalar_lea.vmem %s1410_s13, 512  ;;  %p1412_p0 = scmp.lt.s32.totalorder %s1854_s15, %s1410_s13 }
  0x25   : > { %1334 = vmatprep.subr.bf16.mxu1 %v1333_v4  ;;  %597 = vperm.xlu0 %1395, %v594_v35   ;;  %v755_v37 = vld [vmem:[%s1902_s8] sm:$0xff]  ;;  %v929_v4 = vld [vmem:[%s1897_s3 + $0x18] sm:$0xff]  ;;  %v1006_v5 = vld [vmem:[%s1898_s4 + $0x8] sm:$0xff]  ;;  %p1413_p1 = scmp.lt.s32.totalorder %s1411_s29, %s1405_s25 }
  0x26   : > { %v593_v45 = vld [vmem:[%s1899_s5] sm:$0xff]  ;;  %v1345_v6 = vpack.c.bf16 %v929_v4, %v927_v3  ;;  %v928_v9 = vld [vmem:[%s1897_s3 + $0x10] sm:$0xff] }
  0x27   : > { %1304 = vmatpush3.bf16.msra.mxu0 %v1303_v10  ;;  %v841_v47 = vld [vmem:[%s1904_s10] sm:$0xff]  ;;  %v1349_v10 = vpack.c.bf16 %v1008_v7, %v1006_v5  ;;  %p1414_p2 = por %p1413_p1, %p1412_p0 }
  0x28   : > { %1336 = vmatpush3.bf16.msra.mxu1 %v1335_v12  ;;  %1306 = vmatprep.subr.bf16.mxu0 %v1305_v13  ;;  %v840_v0 = vld [vmem:[%s1903_s9] sm:$0xff]  ;;  %v1007_v13 = vld [vmem:[%s1898_s4 + $0x10] sm:$0xff] }
  0x29   : > { %1338 = vmatprep.subr.bf16.mxu1 %v1337_v17  ;;  %758 = vperm.xlu0 %1395, %v755_v37   ;;  %v754_v2 = vld [vmem:[%s1901_s7] sm:$0xff]  ;;  %p1415_p3 = pnand %p1414_p2, %p1408_p13 }
  0x2a   : > { %844 = vperm.xlu1 %1396, %v841_v47   ;;  %v926_v8 = vld [vmem:[%s1897_s3] sm:$0xff] }
  0x2b   : > { %1308 = vmatpush3.bf16.msra.mxu0 %v1307_v23  ;;  %v1347_v11 = vpack.c.bf16 %v928_v9, %v926_v8  ;;  %v1005_v12 = vld [vmem:[%s1898_s4] sm:$0xff] }
  0x2c   : > { %1340 = vmatpush3.bf16.msra.mxu1 %v1339_v24  ;;  %1310 = vmatprep.subr.bf16.mxu0 %v1309_v25  ;;  %v1351_v14 = vpack.c.bf16 %v1007_v13, %v1005_v12 }
  0x2d   : > { %1342 = vmatprep.subr.bf16.mxu1 %v1341_v28 }
  0x2f   : > { %1312 = vmatpush3.bf16.msra.mxu0 %v1311_v31 }
  0x30   : > { %1344 = vmatpush3.bf16.msra.mxu1 %v1343_v32  ;;  %1261 = vmatprep.subr.mxu0 %v1469_v34 }
  0x31   : > { %1266 = vmatprep.subr.mxu1 %v1469_v34 }
  0x32   : > { %484 = vmatmul.mubr.f32.vlgmr.msra.gmra.mrb[0].mxu0 %v1791_v33 }
  0x33   : > { %586 = vmatmul.mubr.f32.vlgmr.msra.gmra.mrb[0].mxu1 %v1791_v33  ;;  %1263 = vmatprep.mubr.msk.f32.mxu0 %vm1470_vm0, %v1469_v34 }
  0x34   : > { %1268 = vmatprep.mubr.msk.f32.mxu1 %vm1470_vm0, %v1469_v34 }
  0xa4   : > { %v598_v48 = vpop.permute.xlu0 %597 }
  0xa8   : > { %v759_v17 = vpop.permute.xlu0 %758 }
  0xa9   : > { %v845_v15 = vpop.permute.xlu1 %844 }
 0x105   : > { %v1215_v38 = vpop.f32.mrb[0].mxu0 }
 0x106   : > { %v1250_v39 = vpop.f32.mrb[0].mxu1  ;;  %v1216_v40 = vpop.f32.mrb[1].mxu0 }
 0x107   : > { %v1217_v41 = vadd.f32 %v1216_v40, %v1215_v38  ;;  %v1251_v42 = vpop.f32.mrb[1].mxu1 }
 0x108   : > { %v1252_v43 = vadd.f32 %v1251_v42, %v1250_v39 }
 0x109   : > { %v592_v44 = vmul.f32 0.0625, %v1217_v41 }
 0x10a   : > { %v591_v46 = vmul.f32 0.0625, %v1252_v43 }
 0x10b   : > { %1267 = vmatpush3.msra.mxu1 %v592_v44 }
 0x10c   : > { %1262 = vmatpush3.msra.mxu0 %v591_v46  ;;  %1269 = vmatmul.mubr.msk.f32.vlgmr.msra.gmra.mrb[2].mxu1 %vm600_vm1, %v593_v45 }
 0x10d   : > { %1264 = vmatmul.mubr.msk.f32.vlgmr.msra.gmra.mrb[2].mxu0 %vm600_vm1, %v593_v45  ;;  %1271 = vmatprep.subr.mxu0 %v1469_v34 }
 0x10e   : > { %1276 = vmatprep.subr.mxu1 %v1469_v34  ;;  %1273 = vmatprep.mubr.msk.f32.mxu0 %vm1470_vm0, %v1469_v34 }
 0x10f   : > { %1278 = vmatprep.mubr.msk.f32.mxu1 %vm1470_vm0, %v1469_v34 }
 0x1df   : > { %v745_v49 = vpop.f32.mrb[2].mxu1 }
 0x1e0   : > { %v670_v50 = vpop.f32.mrb[2].mxu0  ;;  %v746_v51 = vadd.f32 %v745_v49, %v598_v48  ;;  %v1270_v52 = vpop.f32.mrb[3].mxu1 }
 0x1e1   : > { %v671_v53 = vadd.f32 %v670_v50, %v598_v48  ;;  %v1265_v54 = vpop.f32.mrb[3].mxu0 }
 0x1e2   : > { %v749_v55 = vadd.f32 3.0, %v746_v51 }
 0x1e3   : > { %v674_v56 = vadd.f32 3.0, %v671_v53 }
 0x1e4   : > { %v750_v57 = vmax.f32 %v749_v55, 0.0 }
 0x1e5   : > { %v675_v58 = vmax.f32 %v674_v56, 0.0 }
 0x1e6   : > { %v751_v59 = vmin.f32 %v750_v57, 6.0 }
 0x1e7   : > { %v676_v60 = vmin.f32 %v675_v58, 6.0 }
 0x1e8   : > { %v752_v61 = vmul.f32 %v751_v59, %v746_v51 }
 0x1e9   : > { %v677_v62 = vmul.f32 %v676_v60, %v671_v53 }
 0x1ea   : > { %v753_v63 = vmul.f32 0.16666667, %v752_v61 }
 0x1eb   : > { %v678_v1 = vmul.f32 0.16666667, %v677_v62 }
 0x1ec   : > { %1277 = vmatpush3.msra.mxu1 %v753_v63 }
 0x1ed   : > { %1272 = vmatpush3.msra.mxu0 %v678_v1  ;;  %1279 = vmatmul.mubr.msk.f32.vlgmr.msra.gmra.mrb[4].mxu1 %vm600_vm1, %v840_v0 }
 0x1ee   : > { %1274 = vmatmul.mubr.msk.f32.vlgmr.msra.gmra.mrb[4].mxu0 %vm600_vm1, %v754_v2  ;;  %1076 = vmatprep.mubr.f32.mxu1 %v1469_v34 }
 0x1ef   : > { %998 = vmatprep.mubr.f32.mxu0 %v1469_v34  ;;  %1346 = vmatprep.subr.bf16.mxu0 %v1345_v6 }
 0x1f0   : > { %1350 = vmatprep.subr.bf16.mxu1 %v1349_v10  ;;  %1348 = vmatpush1.bf16.msra.mxu0 %v1347_v11 }
 0x1f1   : > { %1352 = vmatpush1.bf16.msra.mxu1 %v1351_v14 }
 0x2c0   : > { %v916_v18 = vpop.f32.mrb[4].mxu1 }
 0x2c1   : > { %v830_v19 = vpop.f32.mrb[4].mxu0  ;;  %v917_v20 = vadd.f32 %v916_v18, %v845_v15  ;;  %v1280_v21 = vpop.f32.mrb[5].mxu1 }
 0x2c2   : > { %v831_v22 = vadd.f32 %v830_v19, %v759_v17  ;;  %v1275_v23 = vpop.f32.mrb[5].mxu0 }
 0x2c3   : > { %v920_v24 = vsub.f32 0.0, %v917_v20 }
 0x2c4   : > { %v834_v25 = vsub.f32 0.0, %v831_v22 }
 0x2c5   : > { %v921_v26 = vmul.f32 1.442695, %v920_v24 }
 0x2c6   : > { %v835_v27 = vmul.f32 1.442695, %v834_v25 }
 0x2c7   : > { %1397 = vpow2.f32 %v921_v26 }
 0x2c8   : > { %1399 = vpow2.f32 %v835_v27 }
 0x2d1   : > { %v1398_v28 = vpop.eup %1397 }
 0x2d2   : > { %v1400_v29 = vpop.eup %1399  ;;  %v923_v30 = vadd.f32 1.0, %v1398_v28 }
 0x2d3   : > { %v837_v31 = vadd.f32 1.0, %v1400_v29 }
 0x2d4   : > { %1401 = vrcp.f32 %v923_v30 }
 0x2d5   : > { %1403 = vrcp.f32 %v837_v31 }
 0x2de   : > { %v1402_v32 = vpop.eup %1401 }
 0x2df   : > { %v1404_v34 = vpop.eup %1403  ;;  %1175 = vmatmul.mubr.msk.f32.vlgmr.msra.gmra.mrb[6].mxu1 %vm930_vm2, %v1402_v32 }
 0x2e0   : > { %1174 = vmatmul.mubr.msk.f32.vlgmr.msra.gmra.mrb[6].mxu0 %vm930_vm2, %v1404_v34 }
 0x3b2   : > { %v1078_v35 = vpop.f32.mrb[6].mxu1 }
 0x3b3   : > { %v1000_v36 = vpop.f32.mrb[6].mxu0  ;;  %v1080_v37 = vpop.f32.mrb[7].mxu1 }
 0x3b4   : > { %v1083_v38 = vmul.f32 %v1078_v35, %v1000_v36  ;;  %v1002_v39 = vpop.f32.mrb[7].mxu0 }
 0x3b5   : > { %v1084_v40 = vmul.f32 %v1080_v37, %v1002_v39 }
 0x3b6   : > { %v1085_v41 = vmul.f32 %v1083_v38, %v1791_v33 }
 0x3b7   : > { %v1086_v42 = vmul.f32 %v1084_v40, %v1759_v16 }
 0x3b8   : > { %1087 = vst [vmem:[%s379_s16] sm:$0xff] %v1085_v41 }
 0x3b9   : > { %1088 = vst [vmem:[%s379_s16 + $0x8] sm:$0xff] %v1086_v42 }
 0x3ba   : > { %1418 = shalt.err (!%p1415_p3)
}
 0x3bb   : > { %s1419_s30 = scalar_lea.hbm %s1852_s26, 256  ;;  %s1423_s16 = scalar_lea.hbm %s1905_s11, 512 }
 0x3bc   : > { %p1420_p4 = scmp.ne.s32.totalorder %s1852_s26, %s1419_s30  ;;  %p1424_p9 = scmp.lt.u32.totalorder %s1852_s26, %s1905_s11 }
 0x3bd   : > { %p1425_p10 = scmp.lt.u32.totalorder %s1423_s16, %s1419_s30  ;;  %p1427_p12 = scmp.lt.u32.totalorder %s1419_s30, %s1852_s26 }
 0x3be   : > { %p1421_p7 = pnand %p1420_p4, %p1571_p5 }
 0x3bf   : > { %p1426_p11 = por %p1425_p10, %p1424_p9 }
 0x3c0   : > { %p1422_p8 = pneg %p1421_p7 }
 0x3c1   : > { %p1428_p13 = por %p1427_p12, %p1426_p11 }
 0x3c3   : > { %p1429_p0 = pnand %p1428_p13, %p1422_p8 }
 0x3c5   : > { %1432 = shalt.err (!%p1429_p0)
}
 0x3c6   : > { %1353 = dma.vmem_to_hbm [thread:$0]  (%p1571_p5), %s1854_s15, 256, %s1852_s26, %s1090_s21  }
 0x3c7 PF: > { %p1359_p1 = scmp.ge.s32.totalorder %s1467_s20, 2  ;;  %s1116_s25 = sand.u32 1, %s1455_s17  }
 0x3c8   : > { %s1117_s19 = scalar_lea.sflag [#allocation3], %s1116_s25 }
 0x3c9   : > { %p1356_p2 = pnand %p1359_p1, %p1575_p6 }
 0x3cb   : > { %1450 = dma.done.wait (!%p1356_p2), %s1117_s19, 256  }
 0x3cc   : > { %1452 = vsyncadd (!%p1356_p2), %s1117_s19, 4294967040  ;;  %s1911_s13 = sld [smem:[#allocation5_spill]]  ;;  %s1912_s19 = sld [smem:[#allocation6_spill]] }
 0x3cd   : > { %p21_p3 = scmp.ge.s32.totalorder %s1558_s23, 4   ;;  %s1913_s17 = smov %s1459_s18 }
 0x3ce   : > { %s1915_s20 = smov %s1558_s23 }
 0x3cf   :  { %23 = sbr.rel (!%p21_p3) target bundleno = 3 (0x3), region = 99 }
 0x3d2   : > { %s1914_s18 = smov %s1911_s13 }
 0x3d6   :  { %1122 = vsyncpa [#allocation3], 1 }
 0x3d7   :  { %1124 = vsyncpa [#allocation3 + $0x1], 1 }

</bundles_post_ra>
